<compile_context>
chip_gen: v6e
topology: v6e:2x2x1
jax: 0.10.0
libtpu: 0.0.40
codegen_flags: <defaults>
</compile_context>

<pallas_src>
import jax
import jax.numpy as jnp
from jax.experimental import pallas as pl
from jax.experimental.pallas import tpu as pltpu


def _identity_kernel(z_ref, o_ref):
    """out = z  (whole array lives in a single VMEM block)."""
    o_ref[...] = z_ref[...]


def identity_latent_decoder(z, c=None):
    """Forward pass of IdentityLatentDecoder: returns {'global': z}."""
    del c  # the reference module ignores the conditioning input
    ndim = z.ndim
    out = pl.pallas_call(
        _identity_kernel,
        out_shape=jax.ShapeDtypeStruct(z.shape, z.dtype),
        grid=(1,),
        # Full-array block: equals the array dims, so no (8,128) divisibility
        # requirement and exactly one DMA in / one DMA out.
        in_specs=[pl.BlockSpec(z.shape, lambda i: (0,) * ndim)],
        out_specs=pl.BlockSpec(z.shape, lambda i: (0,) * ndim),
        compiler_params=pltpu.CompilerParams(dimension_semantics=("arbitrary",)),
    )(z)
    return {"global": out}


if __name__ == "__main__":
    key = jax.random.PRNGKey(0)
    kz, kc, kz2 = jax.random.split(key, 3)

    # Shapes consistent with how the decoder is used upstream:
    # z: (batch, latent_dim), c: (batch, cond_dim) (ignored by this module).
    B, latent_dim, cond_dim = 2, 32, 32
    z = jax.random.normal(kz, (B, latent_dim), dtype=jnp.float32)
    c = jax.random.normal(kc, (B, cond_dim), dtype=jnp.float32)

    out = jax.jit(lambda z_, c_: identity_latent_decoder(z_, c_))(z, c)
    g = jax.block_until_ready(out["global"])
    assert g.shape == z.shape and g.dtype == z.dtype
    assert bool(jnp.array_equal(g, z)), "identity mismatch (with c)"

    # Also exercise the c=None path and a lane-dense (last dim multiple of 128)
    # latent to confirm the full-array block handles arbitrary shapes.
    z2 = jax.random.normal(kz2, (8, 256), dtype=jnp.float32)
    out2 = jax.jit(lambda z_: identity_latent_decoder(z_))(z2)
    g2 = jax.block_until_ready(out2["global"])
    assert bool(jnp.array_equal(g2, z2)), "identity mismatch (no c)"

    print("KERNEL_OK")
</pallas_src>

<mosaic_0001>
module attributes {stable_mosaic.version = 11 : i64} {
  func.func @_identity_kernel(%arg0: i32, %arg1: memref<2x32xf32, #tpu.memory_space<vmem>>, %arg2: memref<2x32xf32, #tpu.memory_space<vmem>>) attributes {dimension_semantics = [#tpu.dimension_semantics<arbitrary>], iteration_bounds = array<i64: 1>, scalar_prefetch = 0 : i64, scratch_operands = 0 : i64, tpu.core_type = #tpu.core_type<tc>, window_params = [{pipeline_mode = #tpu.pipeline_mode<synchronous>, transform_indices = @transform_0, window_bounds = array<i64: 2, 32>}, {pipeline_mode = #tpu.pipeline_mode<synchronous>, transform_indices = @transform_1, window_bounds = array<i64: 2, 32>}]} {
    %c0 = arith.constant 0 : index
    %c0_0 = arith.constant 0 : index
    %0 = vector.load %arg1[%c0, %c0_0] : memref<2x32xf32, #tpu.memory_space<vmem>>, vector<2x32xf32>
    %c0_1 = arith.constant 0 : index
    %c0_2 = arith.constant 0 : index
    %1 = vector.load %arg2[%c0_1, %c0_2] : memref<2x32xf32, #tpu.memory_space<vmem>>, vector<2x32xf32>
    tpu.vector_store %arg2[%c0_1, %c0_2], %0 {strides = array<i32>} : memref<2x32xf32, #tpu.memory_space<vmem>>, vector<2x32xf32>,
    return
  }
  func.func @transform_0(%arg0: i32) -> (i32, i32) {
    %c0_i32 = arith.constant 0 : i32
    %c0_i32_0 = arith.constant 0 : i32
    %c0_i32_1 = arith.constant 0 : i32
    return %c0_i32, %c0_i32_0 : i32, i32
  }
  func.func @transform_1(%arg0: i32) -> (i32, i32) {
    %c0_i32 = arith.constant 0 : i32
    %c0_i32_0 = arith.constant 0 : i32
    %c0_i32_1 = arith.constant 0 : i32
    return %c0_i32, %c0_i32_0 : i32, i32
  }
}

</mosaic_0001>

<bundles_post_ra>
// kernel: _lambda_.1
= control target key start
LH: loop header
LB: loop body
LE: loop exit
PB: predicated region body
PF: predicated region fallthrough
CT: control target
= control target key end

     0   :  { %6 = vsyncpa [#allocation3], 0  ;;  %s103_s0 = inlined_call_operand.hbm [shape: f32[2,32], index: 0, kind: input, shape index: {}]   ;;  %s104_s1 = inlined_call_operand.hbm [shape: f32[2,32], index: 1, kind: output, shape index: {}]  }
   0x1   :  { %7 = vsyncpa [#allocation4], 0  ;;  %s85_s6 = smov [#allocation2]  }
   0x2   :  { %s14_s7 = sshll.u32 %s85_s6, 4  ;;  %s15_s7 = int_to_ptr.vmem [resolvable:$true] %s14_s7 }
   0x3   :  { %s49_s8 = scalar_lea.vmem %s15_s7, 32  ;;  %p54_p1 = scmp.lt.s32.totalorder %s15_s7, %s15_s7 }
   0x4   :  { %p50_p0 = scmp.ne.s32.totalorder %s15_s7, %s49_s8  ;;  %p55_p2 = scmp.lt.s32.totalorder %s49_s8, %s49_s8 }
   0x6   :  { %p56_p3 = por %p55_p2, %p54_p1 }
   0x8   :  { %p57_p4 = pnand %p56_p3, %p50_p0 }
   0xa   :  { %60 = shalt.err (!%p57_p4)
}
   0xb   :  { %17 = dma.hbm_to_vmem [thread:$0]  %s103_s0, 32, %s15_s7, [#allocation3]  }
   0xc   :  { %81 = dma.done.wait [#allocation3], 32  }
   0xd   :  { %82 = vsyncadd [#allocation3], 4294967264  ;;  %s86_s11 = smov [#allocation5]   ;;  %vm22_vm0 = vcmask 254976   ;;  %v21_v0 = vld [vmem:[#allocation2] sm:$0x3] }
   0xe   :  { %s30_s12 = sshll.u32 %s86_s11, 4  ;;  %23 = vst.msk [vmem:[#allocation5] sm:$0x3] %vm22_vm0, %v21_v0  ;;  %s31_s12 = int_to_ptr.vmem [resolvable:$true] %s30_s12 }
   0xf   :  { %s61_s13 = scalar_lea.vmem %s31_s12, 32  ;;  %p66_p6 = scmp.lt.s32.totalorder %s31_s12, %s31_s12 }
  0x10   :  { %p62_p5 = scmp.ne.s32.totalorder %s31_s12, %s61_s13  ;;  %p67_p7 = scmp.lt.s32.totalorder %s61_s13, %s61_s13 }
  0x12   :  { %p68_p8 = por %p67_p7, %p66_p6 }
  0x14   :  { %p69_p9 = pnand %p68_p8, %p62_p5 }
  0x16   :  { %72 = shalt.err (!%p69_p9)
}
  0x17   :  { %33 = dma.vmem_to_hbm [thread:$0]  %s31_s12, 32, %s104_s1, [#allocation4]  }
  0x18   :  { %83 = dma.done.wait [#allocation4], 32  }
  0x19   :  { %84 = vsyncadd [#allocation4], 4294967264 }
  0x1a   :  { %37 = vsyncpa [#allocation3], 1 }
  0x1b   :  { %38 = vsyncpa [#allocation4], 1 }

</bundles_post_ra>
